<compile_context>
chip_gen: v6e
topology: v6e:2x2x1
jax: 0.10.0
libtpu: 0.0.40
codegen_flags: <defaults>
</compile_context>

<pallas_src>
import functools

import jax
import jax.numpy as jnp
from jax.experimental import pallas as pl
from jax.experimental.pallas import tpu as pltpu


def _round_up(x, m):
    return ((x + m - 1) // m) * m


def _wbce_kernel(logits_ref, targets_ref, weights_ref, out_ref, acc_ref, *,
                 neg_scale, inv_denom, tile_b, tile_c, tiles_per_split,
                 batch, classes, mask_rows, mask_cols):
    i = pl.program_id(0)   # core split (parallel)
    j = pl.program_id(1)   # batch tiles within this split
    k = pl.program_id(2)   # class tiles (reduction, last)

    @pl.when((j == 0) & (k == 0))
    def _():
        acc_ref[...] = jnp.zeros_like(acc_ref)

    x = logits_ref[...].astype(jnp.float32)
    t = targets_ref[...].astype(jnp.float32)
    w = weights_ref[...].astype(jnp.float32)

    # Shared stable softplus: one exp + one log1p per element.
    #   -log_sigmoid(x)  = max(-x, 0) + log1p(exp(-|x|))
    #   -log_sigmoid(-x) = max( x, 0) + log1p(exp(-|x|))
    sp = jnp.log1p(jnp.exp(-jnp.abs(x)))
    nls_pos = jnp.maximum(-x, 0.0) + sp     # = -log_sigmoid(x)
    nls_neg = jnp.maximum(x, 0.0) + sp      # = -log_sigmoid(-x)

    scale = float(neg_scale) if neg_scale > 0 else 1.0   # static hyperparameter
    vals = t * nls_pos + scale * (1.0 - t) * nls_neg
    contrib = vals * w

    if mask_rows:  # static python branch: only emitted when B % tile_b != 0
        row0 = (i * tiles_per_split + j) * tile_b
        rows = row0 + jax.lax.broadcasted_iota(jnp.int32, (tile_b, tile_c), 0)
        contrib = jnp.where(rows < batch, contrib, 0.0)
    if mask_cols:  # static python branch: only emitted when C % tile_c != 0
        col0 = k * tile_c
        cols = col0 + jax.lax.broadcasted_iota(jnp.int32, (tile_b, tile_c), 1)
        contrib = jnp.where(cols < classes, contrib, 0.0)

    # Deferred reduction: steady-state loop is vld + VPU adds only.
    acc_ref[...] += contrib

    @pl.when((j == pl.num_programs(1) - 1) & (k == pl.num_programs(2) - 1))
    def _():
        partial = jnp.sum(acc_ref[...]) * jnp.float32(inv_denom)
        r = jax.lax.broadcasted_iota(jnp.int32, (8, 128), 0)
        c = jax.lax.broadcasted_iota(jnp.int32, (8, 128), 1)
        # Put the per-split partial at [0, 0], zeros elsewhere; wrapper sums.
        out_ref[...] = jnp.where((r == 0) & (c == 0), partial, 0.0)


def weighted_bce_loss(logits, targets, target_weights, *, neg_scale=-1,
                      bce_sum=False, tile_b=1024, tile_c=None,
                      num_core_splits=2, vmem_budget_bytes=24 * 1024 * 1024):
    """Pallas TPU implementation of WeightedBCELoss.forward. Returns a scalar."""
    B, C = logits.shape
    assert targets.shape == (B, C) and target_weights.shape == (B, C)

    # --- tile sizing (VMEM budget keeps 3 inputs x 2 pipeline buffers bounded,
    #     sized conservatively so the same choice fits v7x's 64 MiB VMEM) ---
    tb = min(_round_up(tile_b, 8), _round_up(B, 8))
    itemsize = max(jnp.dtype(a.dtype).itemsize
                   for a in (logits, targets, target_weights))
    if tile_c is None:
        max_c = max(128, vmem_budget_bytes // (3 * 2 * tb * itemsize))
        tc = C if C <= max_c else (max_c // 128) * 128
    else:
        tc = tile_c

    num_b_tiles = pl.cdiv(B, tb)
    num_c_tiles = pl.cdiv(C, tc)
    num_splits = (num_core_splits
                  if (num_core_splits > 1 and num_b_tiles % num_core_splits == 0)
                  else 1)
    tiles_per_split = num_b_tiles // num_splits

    mask_rows = (B % tb) != 0
    mask_cols = (C % tc) != 0
    inv_denom = (1.0 / B) if bce_sum else (1.0 / (B * C))

    kernel = functools.partial(
        _wbce_kernel,
        neg_scale=neg_scale, inv_denom=inv_denom,
        tile_b=tb, tile_c=tc, tiles_per_split=tiles_per_split,
        batch=B, classes=C, mask_rows=mask_rows, mask_cols=mask_cols,
    )

    in_spec = pl.BlockSpec((tb, tc), lambda i, j, k: (i * tiles_per_split + j, k))
    out_spec = pl.BlockSpec((8, 128), lambda i, j, k: (i, 0))

    # VMEM accounting: double-buffered inputs + f32 accumulator + output tile.
    in_bytes = sum(2 * tb * tc * jnp.dtype(a.dtype).itemsize
                   for a in (logits, targets, target_weights))
    acc_bytes = tb * tc * 4
    out_bytes = 2 * 8 * 128 * 4
    vmem_limit = int(max(in_bytes + acc_bytes + out_bytes + (4 << 20), 16 << 20))

    partials = pl.pallas_call(
        kernel,
        out_shape=jax.ShapeDtypeStruct((num_splits * 8, 128), jnp.float32),
        grid_spec=pltpu.PrefetchScalarGridSpec(
            num_scalar_prefetch=0,
            grid=(num_splits, tiles_per_split, num_c_tiles),
            in_specs=[in_spec, in_spec, in_spec],
            out_specs=out_spec,
            scratch_shapes=[pltpu.VMEM((tb, tc), jnp.float32)],
        ),
        compiler_params=pltpu.CompilerParams(
            dimension_semantics=("parallel", "arbitrary", "arbitrary"),
            vmem_limit_bytes=vmem_limit,
        ),
    )(logits, targets, target_weights)

    # Per-split partials live at [s*8, 0]; everything else is zero.
    return jnp.sum(partials)


def weighted_bce_loss_ref(logits, targets, target_weights, *, neg_scale=-1,
                          bce_sum=False):
    """Pure-JAX reference mirroring the PyTorch module."""
    ls = jax.nn.log_sigmoid
    logits = logits.astype(jnp.float32)
    targets = targets.astype(jnp.float32)
    target_weights = target_weights.astype(jnp.float32)
    neg_vals = ls(-logits) * (1.0 - targets)
    if neg_scale > 0:
        neg_vals = neg_vals * neg_scale
    vals = -targets * ls(logits) - neg_vals
    losses = jnp.sum(vals * target_weights, axis=-1)
    if not bce_sum:
        losses = losses / logits.shape[1]
    return jnp.mean(losses)


def _check(kernel_kwargs, B, C, key, dtype=jnp.float32):
    k1, k2, k3 = jax.random.split(key, 3)
    logits = (jax.random.normal(k1, (B, C), dtype=jnp.float32) * 2.0).astype(dtype)
    targets = (jax.random.uniform(k2, (B, C)) > 0.5).astype(dtype)
    weights = jax.random.uniform(k3, (B, C), dtype=jnp.float32).astype(dtype)

    ref_kwargs = {k: v for k, v in kernel_kwargs.items()
                  if k in ("neg_scale", "bce_sum")}
    out = jax.block_until_ready(
        weighted_bce_loss(logits, targets, weights, **kernel_kwargs))
    ref = weighted_bce_loss_ref(logits, targets, weights, **ref_kwargs)
    assert jnp.allclose(out, ref, rtol=1e-5, atol=1e-5), (kernel_kwargs, out, ref)


if __name__ == "__main__":
    key = jax.random.PRNGKey(0)
    keys = jax.random.split(key, 5)

    # Small ragged shape: exercises both row and column masking (B<8, C!=128k).
    _check(dict(neg_scale=-1, bce_sum=False), B=6, C=20, key=keys[0])
    # neg_scale / bce_sum variants.
    _check(dict(neg_scale=2.0, bce_sum=True), B=6, C=20, key=keys[1])
    # Multi-tile batch with a 2-way core split (8 batch tiles of 8 rows).
    _check(dict(neg_scale=-1, bce_sum=False, tile_b=8, num_core_splits=2),
           B=64, C=128, key=keys[2])
    # Explicit class tiling (2 class tiles) plus a ragged batch tail.
    _check(dict(neg_scale=1.5, bce_sum=False, tile_b=16, tile_c=128),
           B=40, C=256, key=keys[3])
    # bf16 inputs (kernel upcasts to f32 internally).
    _check(dict(neg_scale=-1, bce_sum=False), B=16, C=128, key=keys[4],
           dtype=jnp.bfloat16)

    print("KERNEL_OK")
</pallas_src>

<mosaic_0001>
module attributes {stable_mosaic.version = 11 : i64} {
  func.func @_wbce_kernel(%arg0: i32, %arg1: i32, %arg2: i32, %arg3: memref<8x20xf32, #tpu.memory_space<vmem>>, %arg4: memref<8x20xf32, #tpu.memory_space<vmem>>, %arg5: memref<8x20xf32, #tpu.memory_space<vmem>>, %arg6: memref<8x128xf32, #tpu.memory_space<vmem>>, %arg7: memref<8x20xf32, #tpu.memory_space<vmem>>) attributes {dimension_semantics = [#tpu.dimension_semantics<parallel>, #tpu.dimension_semantics<arbitrary>, #tpu.dimension_semantics<arbitrary>], iteration_bounds = array<i64: 1, 1, 1>, scalar_prefetch = 0 : i64, scratch_operands = 1 : i64, tpu.core_type = #tpu.core_type<tc>, window_params = [{transform_indices = @transform_0, window_bounds = array<i64: 8, 20>}, {transform_indices = @transform_1, window_bounds = array<i64: 8, 20>}, {transform_indices = @transform_2, window_bounds = array<i64: 8, 20>}, {transform_indices = @transform_3, window_bounds = array<i64: 8, 128>}]} {
    %c0_i32 = arith.constant 0 : i32
    %0 = arith.cmpi eq, %arg1, %c0_i32 : i32
    %c0_i32_0 = arith.constant 0 : i32
    %1 = arith.cmpi eq, %arg2, %c0_i32_0 : i32
    %2 = arith.andi %0, %1 : i1
    %3 = arith.extui %2 : i1 to i32
    %c0_i32_1 = arith.constant 0 : i32
    %4 = arith.cmpi ne, %3, %c0_i32_1 : i32
    scf.if %4 {
      %cst_20 = arith.constant 0.000000e+00 : f32
      %47 = vector.broadcast %cst_20 : f32 to vector<8x20xf32>
      %c0_21 = arith.constant 0 : index
      %c0_22 = arith.constant 0 : index
      %48 = vector.load %arg7[%c0_21, %c0_22] : memref<8x20xf32, #tpu.memory_space<vmem>>, vector<8x20xf32>
      tpu.vector_store %arg7[%c0_21, %c0_22], %47 {strides = array<i32>} : memref<8x20xf32, #tpu.memory_space<vmem>>, vector<8x20xf32>,
    } else {
    }
    %c0 = arith.constant 0 : index
    %c0_2 = arith.constant 0 : index
    %5 = vector.load %arg3[%c0, %c0_2] : memref<8x20xf32, #tpu.memory_space<vmem>>, vector<8x20xf32>
    %c0_3 = arith.constant 0 : index
    %c0_4 = arith.constant 0 : index
    %6 = vector.load %arg4[%c0_3, %c0_4] : memref<8x20xf32, #tpu.memory_space<vmem>>, vector<8x20xf32>
    %c0_5 = arith.constant 0 : index
    %c0_6 = arith.constant 0 : index
    %7 = vector.load %arg5[%c0_5, %c0_6] : memref<8x20xf32, #tpu.memory_space<vmem>>, vector<8x20xf32>
    %8 = math.absf %5 : vector<8x20xf32>
    %cst = arith.constant 0.000000e+00 : f32
    %9 = vector.broadcast %cst : f32 to vector<8x20xf32>
    %10 = arith.subf %9, %8 : vector<8x20xf32>
    %11 = math.exp %10 : vector<8x20xf32>
    %12 = math.log1p %11 : vector<8x20xf32>
    %cst_7 = arith.constant 0.000000e+00 : f32
    %13 = vector.broadcast %cst_7 : f32 to vector<8x20xf32>
    %14 = arith.subf %13, %5 : vector<8x20xf32>
    %cst_8 = arith.constant 0.000000e+00 : f32
    %15 = vector.broadcast %cst_8 : f32 to vector<8x20xf32>
    %16 = arith.maximumf %14, %15 : vector<8x20xf32>
    %17 = arith.addf %16, %12 : vector<8x20xf32>
    %cst_9 = arith.constant 0.000000e+00 : f32
    %18 = vector.broadcast %cst_9 : f32 to vector<8x20xf32>
    %19 = arith.maximumf %5, %18 : vector<8x20xf32>
    %20 = arith.addf %19, %12 : vector<8x20xf32>
    %21 = arith.mulf %6, %17 : vector<8x20xf32>
    %cst_10 = arith.constant 1.000000e+00 : f32
    %22 = vector.broadcast %cst_10 : f32 to vector<8x20xf32>
    %23 = arith.subf %22, %6 : vector<8x20xf32>
    %cst_11 = arith.constant 1.000000e+00 : f32
    %24 = vector.broadcast %cst_11 : f32 to vector<8x20xf32>
    %25 = arith.mulf %24, %23 : vector<8x20xf32>
    %26 = arith.mulf %25, %20 : vector<8x20xf32>
    %27 = arith.addf %21, %26 : vector<8x20xf32>
    %28 = arith.mulf %27, %7 : vector<8x20xf32>
    %c1_i32 = arith.constant 1 : i32
    %29 = arith.muli %arg0, %c1_i32 : i32
    %30 = arith.addi %29, %arg1 : i32
    %c8_i32 = arith.constant 8 : i32
    %31 = arith.muli %30, %c8_i32 : i32
    %32 = tpu.iota {dimensions = array<i32: 0>} : vector<8x20xi32>
    %33 = vector.broadcast %31 : i32 to vector<8x20xi32>
    %34 = arith.addi %33, %32 : vector<8x20xi32>
    %c6_i32 = arith.constant 6 : i32
    %35 = vector.broadcast %c6_i32 : i32 to vector<8x20xi32>
    %36 = arith.cmpi slt, %34, %35 : vector<8x20xi32>
    %cst_12 = arith.constant 0.000000e+00 : f32
    %37 = vector.broadcast %cst_12 : f32 to vector<8x20xf32>
    %38 = arith.select %36, %28, %37 : vector<8x20xi1>, vector<8x20xf32>
    %c0_13 = arith.constant 0 : index
    %c0_14 = arith.constant 0 : index
    %39 = vector.load %arg7[%c0_13, %c0_14] : memref<8x20xf32, #tpu.memory_space<vmem>>, vector<8x20xf32>
    %40 = arith.addf %39, %38 : vector<8x20xf32>
    %c0_15 = arith.constant 0 : index
    %c0_16 = arith.constant 0 : index
    %41 = vector.load %arg7[%c0_15, %c0_16] : memref<8x20xf32, #tpu.memory_space<vmem>>, vector<8x20xf32>
    tpu.vector_store %arg7[%c0_15, %c0_16], %40 {strides = array<i32>} : memref<8x20xf32, #tpu.memory_space<vmem>>, vector<8x20xf32>,
    %c0_i32_17 = arith.constant 0 : i32
    %42 = arith.cmpi eq, %arg1, %c0_i32_17 : i32
    %c0_i32_18 = arith.constant 0 : i32
    %43 = arith.cmpi eq, %arg2, %c0_i32_18 : i32
    %44 = arith.andi %42, %43 : i1
    %45 = arith.extui %44 : i1 to i32
    %c0_i32_19 = arith.constant 0 : i32
    %46 = arith.cmpi ne, %45, %c0_i32_19 : i32
    scf.if %46 {
      %c0_20 = arith.constant 0 : index
      %c0_21 = arith.constant 0 : index
      %47 = vector.load %arg7[%c0_20, %c0_21] : memref<8x20xf32, #tpu.memory_space<vmem>>, vector<8x20xf32>
      %48 = vector.shape_cast %47 : vector<8x20xf32> to vector<1x8x20xf32>
      %cst_22 = arith.constant dense<0.000000e+00> : vector<1xf32>
      %49 = vector.multi_reduction <add>, %48, %cst_22 [1, 2] : vector<1x8x20xf32> to vector<1xf32>
      %50 = vector.shape_cast %49 : vector<1xf32> to vector<1x1x1xf32>
      %51 = vector.extract %50[0, 0, 0] : f32 from vector<1x1x1xf32>
      %cst_23 = arith.constant 0.00833333377 : f32
      %52 = arith.mulf %51, %cst_23 : f32
      %53 = tpu.iota {dimensions = array<i32: 0>} : vector<8x128xi32>
      %54 = tpu.iota {dimensions = array<i32: 1>} : vector<8x128xi32>
      %c0_i32_24 = arith.constant 0 : i32
      %55 = vector.broadcast %c0_i32_24 : i32 to vector<8x128xi32>
      %56 = arith.cmpi eq, %53, %55 : vector<8x128xi32>
      %c0_i32_25 = arith.constant 0 : i32
      %57 = vector.broadcast %c0_i32_25 : i32 to vector<8x128xi32>
      %58 = arith.cmpi eq, %54, %57 : vector<8x128xi32>
      %59 = arith.andi %56, %58 : vector<8x128xi1>
      %cst_26 = arith.constant 0.000000e+00 : f32
      %60 = vector.broadcast %52 : f32 to vector<8x128xf32>
      %61 = vector.broadcast %cst_26 : f32 to vector<8x128xf32>
      %62 = arith.select %59, %60, %61 : vector<8x128xi1>, vector<8x128xf32>
      %c0_27 = arith.constant 0 : index
      %c0_28 = arith.constant 0 : index
      %63 = vector.load %arg6[%c0_27, %c0_28] : memref<8x128xf32, #tpu.memory_space<vmem>>, vector<8x128xf32>
      tpu.vector_store %arg6[%c0_27, %c0_28], %62 {strides = array<i32>} : memref<8x128xf32, #tpu.memory_space<vmem>>, vector<8x128xf32>,
    } else {
    }
    return
  }
  func.func @transform_0(%arg0: i32, %arg1: i32, %arg2: i32) -> (i32, i32) {
    %c1_i32 = arith.constant 1 : i32
    %0 = arith.muli %arg0, %c1_i32 : i32
    %1 = arith.addi %0, %arg1 : i32
    %c0_i32 = arith.constant 0 : i32
    return %1, %arg2 : i32, i32
  }
  func.func @transform_1(%arg0: i32, %arg1: i32, %arg2: i32) -> (i32, i32) {
    %c1_i32 = arith.constant 1 : i32
    %0 = arith.muli %arg0, %c1_i32 : i32
    %1 = arith.addi %0, %arg1 : i32
    %c0_i32 = arith.constant 0 : i32
    return %1, %arg2 : i32, i32
  }
  func.func @transform_2(%arg0: i32, %arg1: i32, %arg2: i32) -> (i32, i32) {
    %c1_i32 = arith.constant 1 : i32
    %0 = arith.muli %arg0, %c1_i32 : i32
    %1 = arith.addi %0, %arg1 : i32
    %c0_i32 = arith.constant 0 : i32
    return %1, %arg2 : i32, i32
  }
  func.func @transform_3(%arg0: i32, %arg1: i32, %arg2: i32) -> (i32, i32) {
    %c0_i32 = arith.constant 0 : i32
    %c0_i32_0 = arith.constant 0 : i32
    return %arg0, %c0_i32 : i32, i32
  }
}

</mosaic_0001>

<bundles_post_ra>
// kernel: tpu_custom_call.1
= control target key start
LH: loop header
LB: loop body
LE: loop exit
PB: predicated region body
PF: predicated region fallthrough
CT: control target
= control target key end

     0   :  { %8 = vsyncpa [#allocation4], 0  ;;  %s283_s0 = inlined_call_operand.hbm [shape: f32[6,20], index: 0, kind: input, shape index: {}]   ;;  %s284_s1 = inlined_call_operand.hbm [shape: f32[6,20], index: 1, kind: input, shape index: {}]   ;;  %s285_s2 = inlined_call_operand.hbm [shape: f32[6,20], index: 2, kind: input, shape index: {}]   ;;  %s286_s3 = inlined_call_operand.hbm [shape: f32[8,128], index: 3, kind: output, shape index: {}]  }
   0x1   :  { %9 = vsyncpa [#allocation7], 0 }
   0x2   :  { %10 = vsyncpa [#allocation5], 0  ;;  %s243_s12 = smov [#allocation6]   ;;  %s244_s14 = smov [#allocation3]  }
   0x3   :  { %s33_s13 = sshll.u32 %s243_s12, 4  ;;  %s20_s15 = sshll.u32 %s244_s14, 4  ;;  %s34_s13 = int_to_ptr.vmem [resolvable:$true] %s33_s13  ;;  %s21_s15 = int_to_ptr.vmem [resolvable:$true] %s20_s15 }
   0x4   :  { %s165_s16 = scalar_lea.vmem %s34_s13, 128  ;;  %p170_p1 = scmp.lt.s32.totalorder %s34_s13, %s34_s13 }
   0x5   :  { %p166_p0 = scmp.ne.s32.totalorder %s34_s13, %s165_s16  ;;  %p171_p2 = scmp.lt.s32.totalorder %s165_s16, %s165_s16 }
   0x7   :  { %p172_p3 = por %p171_p2, %p170_p1 }
   0x9   :  { %p173_p4 = pnand %p172_p3, %p166_p0 }
   0xb   :  { %176 = shalt.err (!%p173_p4)
}
   0xc   :  { %36 = dma.hbm_to_vmem [thread:$0]  %s284_s1, 128, %s34_s13, [#allocation7]  }
   0xd   :  { %s185_s19 = scalar_lea.vmem %s21_s15, 128  ;;  %p190_p6 = scmp.lt.s32.totalorder %s21_s15, %s21_s15 }
   0xe   :  { %p186_p5 = scmp.ne.s32.totalorder %s21_s15, %s185_s19  ;;  %p191_p7 = scmp.lt.s32.totalorder %s185_s19, %s185_s19 }
  0x10   :  { %p192_p8 = por %p191_p7, %p190_p6 }
  0x12   :  { %p193_p9 = pnand %p192_p8, %p186_p5 }
  0x14   :  { %196 = shalt.err (!%p193_p9)
}
  0x15   :  { %23 = dma.hbm_to_vmem [thread:$0]  %s283_s0, 128, %s21_s15, [#allocation4]  }
  0x16   :  { %s245_s22 = smov [#allocation8]  }
  0x17   :  { %s46_s23 = sshll.u32 %s245_s22, 4  ;;  %s47_s23 = int_to_ptr.vmem [resolvable:$true] %s46_s23 }
  0x18   :  { %s205_s24 = scalar_lea.vmem %s47_s23, 128  ;;  %p210_p11 = scmp.lt.s32.totalorder %s47_s23, %s47_s23 }
  0x19   :  { %p206_p10 = scmp.ne.s32.totalorder %s47_s23, %s205_s24  ;;  %p211_p12 = scmp.lt.s32.totalorder %s205_s24, %s205_s24 }
  0x1b   :  { %p212_p13 = por %p211_p12, %p210_p11 }
  0x1d   :  { %p213_p0 = pnand %p212_p13, %p206_p10 }
  0x1f   :  { %216 = shalt.err (!%p213_p0)
}
  0x20   :  { %49 = dma.hbm_to_vmem [thread:$0]  %s285_s2, 128, %s47_s23, [#allocation7]  }
  0x21   :  { %237 = dma.done.wait [#allocation4], 128  }
  0x22   :  { %238 = vsyncadd [#allocation4], 4294967168 }
  0x23   :  { %239 = dma.done.wait [#allocation7], 256  }
  0x24   :  { %240 = vsyncadd [#allocation7], 4294967040  ;;  %vm68_vm0 = vcmask 162816   ;;  %v246_v0 = vmov 0.0   ;;  %v70_v1 = vld [vmem:[#allocation3] sm:$0xff]  ;;  %v71_v11 = vld [vmem:[#allocation6] sm:$0xff]  ;;  %v98_v17 = vlaneseq }
  0x25   :  { %69 = vst.msk [vmem:[#allocation2] sm:$0xff] %vm68_vm0, %v246_v0  ;;  %v73_v2 = vand.u32 2147483647, %v70_v1  ;;  %v86_v10 = vsub.f32 0.0, %v70_v1  ;;  %v89_v15 = vmax.f32 %v70_v1, 0.0  ;;  %v92_v18 = vsub.f32 1.0, %v71_v11 }
  0x26   :  { %v99_v22 = vshrl.u32 %v98_v17, 7  ;;  %v72_v25 = vld [vmem:[#allocation8] sm:$0xff]  ;;  %v123_v40 = vand.u32 127, %v98_v17  ;;  %s247_s2 = smov [#allocation9]  }
  0x27   :  { %v74_v3 = vsub.f32 0.0, %v73_v2  ;;  %v87_v14 = vmax.f32 %v86_v10, 0.0  ;;  %s136_s26 = sshll.u32 %s247_s2, 4  ;;  %s137_s26 = int_to_ptr.vmem [resolvable:$true] %s136_s26 }
  0x28   :  { %vm102_vm2 = vcmp.lt.s32.totalorder %v99_v22, 6  ;;  %vm124_vm3 = vcmp.eq.s32.totalorder %v99_v22, 0  ;;  %vm125_vm4 = vcmp.eq.s32.totalorder %v123_v40, 0  ;;  %s217_s28 = scalar_lea.vmem %s137_s26, 128  ;;  %p222_p2 = scmp.lt.s32.totalorder %s137_s26, %s137_s26 }
  0x29   :  { %v75_v4 = vmul.f32 1.442695, %v74_v3  ;;  %vm126_vm5 = vmand %vm124_vm3, %vm125_vm4  ;;  %p218_p1 = scmp.ne.s32.totalorder %s137_s26, %s217_s28  ;;  %p223_p3 = scmp.lt.s32.totalorder %s217_s28, %s217_s28 }
  0x2b   :  { %153 = vpow2.f32 %v75_v4  ;;  %p224_p4 = por %p223_p3, %p222_p2 }
  0x2c   :  { %v104_v28 = vld [vmem:[#allocation2] sm:$0xff] }
  0x2d   :  { %p225_p5 = pnand %p224_p4, %p218_p1 }
  0x38   :  { %v154_v5 = vpop.eup %153 }
  0x39   :  { %v77_v6 = vadd.f32 1.0, %v154_v5  ;;  %v80_v7 = vmul.f32 -0.5, %v154_v5  ;;  %v83_v9 = vand.u32 2147483647, %v154_v5 }
  0x3b   :  { %155 = vlog2.f32 %v77_v6  ;;  %v81_v8 = vadd.f32 1.0, %v80_v7  ;;  %vm84_vm1 = vcmp.lt.f32.partialorder %v83_v9, 0.0004427343 }
  0x3d   :  { %v82_v12 = vmul.f32 %v154_v5, %v81_v8 }
  0x48   :  { %v156_v13 = vpop.eup %155 }
  0x49   :  { %v79_v16 = vmul.f32 0.6931472, %v156_v13 }
  0x4b   :  { %v85_v19 = vsel %vm84_vm1, %v82_v12, %v79_v16 }
  0x4c   :  { %v88_v20 = vadd.f32 %v87_v14, %v85_v19  ;;  %v90_v21 = vadd.f32 %v89_v15, %v85_v19 }
  0x4e   :  { %v91_v23 = vmul.f32 %v88_v20, %v71_v11  ;;  %v93_v24 = vmul.f32 %v92_v18, %v90_v21 }
  0x50   :  { %v94_v26 = vadd.f32 %v93_v24, %v91_v23 }
  0x52   :  { %v95_v27 = vmul.f32 %v94_v26, %v72_v25 }
  0x54   :  { %v103_v29 = vsel %vm102_vm2, %v95_v27, 0.0 }
  0x55   :  { %v105_v30 = vadd.f32 %v104_v28, %v103_v29 }
  0x57   :  { %107 = vst.msk [vmem:[#allocation2] sm:$0xff] %vm68_vm0, %v105_v30 }
  0x5e   :  { %v110_v31 = vld [vmem:[#allocation2] sm:$0xff] }
  0x5f   :  { %v111_v32 = vsel %vm68_vm0, %v110_v31, 0.0 }
  0x60   :  { %112 = vadd.xlane.f32.xlu0 %v111_v32 }
  0xe9   :  { %v113_v33 = vpop.xlane.xlu0 %112 }
  0xea   :  { %v114_v34 = vrot.slane %v113_v33, 4 }
  0xec   :  { %v115_v35 = vadd.f32 %v114_v34, %v113_v33 }
  0xee   :  { %v116_v36 = vrot.slane %v115_v35, 2 }
  0xf0   :  { %v117_v37 = vadd.f32 %v116_v36, %v115_v35 }
  0xf2   :  { %v118_v38 = vrot.slane %v117_v37, 1 }
  0xf4   :  { %v119_v39 = vadd.f32 %v118_v38, %v117_v37 }
  0xf6   :  { %146 = vpush %v119_v39 }
 0x127   :  { %s147_s0 = spop %146 }
 0x128   :  { %s121_s27 = smul.f32 0.008333334, %s147_s0 }
 0x12a   :  { %v127_v41 = vstv %s121_s27 }
 0x12b   :  { %v128_v42 = vsel %vm126_vm5, %v127_v41, 0.0 }
 0x12c   :  { %129 = vst [vmem:[#allocation9] sm:$0xff] %v128_v42 }
 0x12d   :  { %228 = shalt.err (!%p225_p5)
}
 0x12e   :  { %139 = dma.vmem_to_hbm [thread:$0]  %s137_s26, 128, %s286_s3, [#allocation5]  }
 0x12f   :  { %241 = dma.done.wait [#allocation5], 128  }
 0x130   :  { %242 = vsyncadd [#allocation5], 4294967168 }
 0x131   :  { %143 = vsyncpa [#allocation4], 1 }
 0x132   :  { %144 = vsyncpa [#allocation7], 1 }
 0x133   :  { %145 = vsyncpa [#allocation5], 1 }

</bundles_post_ra>
